<compile_context>
chip_gen: v7x
topology: tpu7x:2x2x1
jax: 0.10.0
libtpu: 0.0.40
codegen_flags: <defaults>
</compile_context>

<pallas_src>
import functools

import jax
import jax.numpy as jnp
from jax.experimental import pallas as pl
from jax.experimental.pallas import tpu as pltpu

HIDDEN = 128      # fc1 output width (fixed by the module)
LANE = 128        # TPU lane width
SUBLANE = 8       # f32 sublane granularity


def _round_up(x, m):
    return (x + m - 1) // m * m


def _mlp_kernel(x_ref, w1_ref, b1_ref, w2_ref, b2_ref, o_ref):
    # fc1: bf16 operands on the MXU, f32 accumulation.
    h = jnp.dot(x_ref[...], w1_ref[...], preferred_element_type=jnp.float32)
    # Bias + ReLU in f32 on full (8,128)-aligned vregs (VPU, co-issues with MXU).
    h = jnp.maximum(h + b1_ref[...], 0.0)
    # fc2: cast activations to bf16 for the MXU, accumulate in f32.
    out = jnp.dot(h.astype(jnp.bfloat16), w2_ref[...],
                  preferred_element_type=jnp.float32)
    o_ref[...] = (out + b2_ref[...]).astype(o_ref.dtype)


@functools.partial(jax.jit, static_argnames=("block_b",))
def simple_ann_forward(x, w1, b1, w2, b2, *, block_b=512):
    """x: (batch, input_size, 50) float32. Returns (batch, num_classes) float32.

    Weights are stored transposed: w1 (in_features, 128), w2 (128, num_classes).
    """
    batch = x.shape[0]
    x_flat = x.reshape(batch, -1)                  # == torch x.view(B, -1)
    k = x_flat.shape[1]
    num_classes = w2.shape[1]

    # ---- Pad to lane/sublane-aligned shapes (all pads are zeros -> no effect). ----
    kp = _round_up(k, LANE)                        # 400 -> 512: full MXU K-slabs
    cp = _round_up(num_classes, LANE)              # 10  -> 128: lane-dense output

    bp8 = _round_up(batch, SUBLANE)
    if bp8 <= block_b:
        tb = bp8                                   # single batch tile
        bp = bp8
    else:
        tb = block_b                               # batch grid, tile of `block_b` rows
        bp = _round_up(batch, tb)

    x_p = jnp.pad(x_flat.astype(jnp.bfloat16), ((0, bp - batch), (0, kp - k)))
    w1_p = jnp.pad(w1.astype(jnp.bfloat16), ((0, kp - k), (0, 0)))
    w2_p = jnp.pad(w2.astype(jnp.bfloat16), ((0, 0), (0, cp - num_classes)))
    b1_p = b1.reshape(1, HIDDEN).astype(jnp.float32)
    b2_p = jnp.pad(b2.reshape(1, num_classes).astype(jnp.float32),
                   ((0, 0), (0, cp - num_classes)))

    grid = (bp // tb,)

    out_p = pl.pallas_call(
        _mlp_kernel,
        out_shape=jax.ShapeDtypeStruct((bp, cp), jnp.float32),
        grid_spec=pltpu.PrefetchScalarGridSpec(
            num_scalar_prefetch=0,
            grid=grid,
            in_specs=[
                pl.BlockSpec((tb, kp), lambda i: (i, 0)),       # x: batch-tiled
                pl.BlockSpec((kp, HIDDEN), lambda i: (0, 0)),   # w1: resident
                pl.BlockSpec((1, HIDDEN), lambda i: (0, 0)),    # b1: resident
                pl.BlockSpec((HIDDEN, cp), lambda i: (0, 0)),   # w2: resident
                pl.BlockSpec((1, cp), lambda i: (0, 0)),        # b2: resident
            ],
            out_specs=pl.BlockSpec((tb, cp), lambda i: (i, 0)),
        ),
        compiler_params=pltpu.CompilerParams(
            dimension_semantics=("parallel",),      # shard batch tiles across TCs (v7x)
            vmem_limit_bytes=32 * 1024 * 1024,      # well under v7x's 64 MiB physical
        ),
    )(x_p, w1_p, b1_p, w2_p, b2_p)

    # Slice off batch / class padding.
    return out_p[:batch, :num_classes]


def init_params(key, input_size, num_classes):
    """Deterministic init mirroring nn.Linear shapes (stored transposed)."""
    in_features = input_size * 50
    k1, k2, k3, k4 = jax.random.split(key, 4)
    bound1 = 1.0 / jnp.sqrt(in_features)
    bound2 = 1.0 / jnp.sqrt(128.0)
    w1 = jax.random.uniform(k1, (in_features, 128), jnp.float32, -bound1, bound1)
    b1 = jax.random.uniform(k2, (128,), jnp.float32, -bound1, bound1)
    w2 = jax.random.uniform(k3, (128, num_classes), jnp.float32, -bound2, bound2)
    b2 = jax.random.uniform(k4, (num_classes,), jnp.float32, -bound2, bound2)
    return w1, b1, w2, b2


if __name__ == "__main__":
    input_size = 8          # -> fc1 in_features = 8 * 50 = 400
    num_classes = 10
    batch = 2

    key = jax.random.PRNGKey(0)
    kx, kp_ = jax.random.split(key)
    x = jax.random.normal(kx, (batch, input_size, 50), jnp.float32)
    w1, b1, w2, b2 = init_params(kp_, input_size, num_classes)

    out = simple_ann_forward(x, w1, b1, w2, b2)
    out = jax.block_until_ready(out)

    # Pure-JAX reference with the same bf16-operand / f32-accumulation math.
    x_flat = x.reshape(batch, -1)
    h_ref = jnp.maximum(
        jnp.dot(x_flat.astype(jnp.bfloat16), w1.astype(jnp.bfloat16),
                preferred_element_type=jnp.float32) + b1, 0.0)
    ref = jnp.dot(h_ref.astype(jnp.bfloat16), w2.astype(jnp.bfloat16),
                  preferred_element_type=jnp.float32) + b2

    assert out.shape == (batch, num_classes)
    assert jnp.allclose(out, ref, atol=1e-2, rtol=1e-2), (out, ref)

    print("KERNEL_OK")
</pallas_src>

<mosaic_0001>
module attributes {stable_mosaic.version = 11 : i64} {
  func.func @_mlp_kernel(%arg0: i32, %arg1: memref<8x512xbf16, #tpu.memory_space<vmem>>, %arg2: memref<512x128xbf16, #tpu.memory_space<vmem>>, %arg3: memref<1x128xf32, #tpu.memory_space<vmem>>, %arg4: memref<128x128xbf16, #tpu.memory_space<vmem>>, %arg5: memref<1x128xf32, #tpu.memory_space<vmem>>, %arg6: memref<8x128xf32, #tpu.memory_space<vmem>>) attributes {dimension_semantics = [#tpu.dimension_semantics<parallel>], iteration_bounds = array<i64: 1>, scalar_prefetch = 0 : i64, scratch_operands = 0 : i64, tpu.core_type = #tpu.core_type<tc>, window_params = [{transform_indices = @transform_0, window_bounds = array<i64: 8, 512>}, {pipeline_mode = #tpu.pipeline_mode<synchronous>, transform_indices = @transform_1, window_bounds = array<i64: 512, 128>}, {pipeline_mode = #tpu.pipeline_mode<synchronous>, transform_indices = @transform_2, window_bounds = array<i64: 1, 128>}, {pipeline_mode = #tpu.pipeline_mode<synchronous>, transform_indices = @transform_3, window_bounds = array<i64: 128, 128>}, {pipeline_mode = #tpu.pipeline_mode<synchronous>, transform_indices = @transform_4, window_bounds = array<i64: 1, 128>}, {transform_indices = @transform_5, window_bounds = array<i64: 8, 128>}]} {
    %c0 = arith.constant 0 : index
    %c0_0 = arith.constant 0 : index
    %0 = vector.load %arg1[%c0, %c0_0] : memref<8x512xbf16, #tpu.memory_space<vmem>>, vector<8x512xbf16>
    %c0_1 = arith.constant 0 : index
    %c0_2 = arith.constant 0 : index
    %1 = vector.load %arg2[%c0_1, %c0_2] : memref<512x128xbf16, #tpu.memory_space<vmem>>, vector<512x128xbf16>
    %cst = arith.constant dense<0.000000e+00> : vector<8x128xf32>
    %2 = tpu.matmul %0, %1, %cst {dimension_numbers = #tpu.dot_dimension_numbers<[1], [0], [0], [1], [0, 0, 1, 1], [], []>} : vector<8x512xbf16>, vector<512x128xbf16>, vector<8x128xf32> -> vector<8x128xf32>
    %c0_3 = arith.constant 0 : index
    %c0_4 = arith.constant 0 : index
    %3 = vector.load %arg3[%c0_3, %c0_4] : memref<1x128xf32, #tpu.memory_space<vmem>>, vector<1x128xf32>
    %4 = vector.broadcast %3 : vector<1x128xf32> to vector<8x128xf32>
    %5 = arith.addf %2, %4 : vector<8x128xf32>
    %cst_5 = arith.constant 0.000000e+00 : f32
    %6 = vector.broadcast %cst_5 : f32 to vector<8x128xf32>
    %7 = arith.maximumf %5, %6 : vector<8x128xf32>
    %8 = arith.truncf %7 : vector<8x128xf32> to vector<8x128xbf16>
    %c0_6 = arith.constant 0 : index
    %c0_7 = arith.constant 0 : index
    %9 = vector.load %arg4[%c0_6, %c0_7] : memref<128x128xbf16, #tpu.memory_space<vmem>>, vector<128x128xbf16>
    %cst_8 = arith.constant dense<0.000000e+00> : vector<8x128xf32>
    %10 = tpu.matmul %8, %9, %cst_8 {dimension_numbers = #tpu.dot_dimension_numbers<[1], [0], [0], [1], [0, 0, 1, 1], [], []>} : vector<8x128xbf16>, vector<128x128xbf16>, vector<8x128xf32> -> vector<8x128xf32>
    %c0_9 = arith.constant 0 : index
    %c0_10 = arith.constant 0 : index
    %11 = vector.load %arg5[%c0_9, %c0_10] : memref<1x128xf32, #tpu.memory_space<vmem>>, vector<1x128xf32>
    %12 = vector.broadcast %11 : vector<1x128xf32> to vector<8x128xf32>
    %13 = arith.addf %10, %12 : vector<8x128xf32>
    %c0_11 = arith.constant 0 : index
    %c0_12 = arith.constant 0 : index
    %14 = vector.load %arg6[%c0_11, %c0_12] : memref<8x128xf32, #tpu.memory_space<vmem>>, vector<8x128xf32>
    tpu.vector_store %arg6[%c0_11, %c0_12], %13 {strides = array<i32>} : memref<8x128xf32, #tpu.memory_space<vmem>>, vector<8x128xf32>,
    return
  }
  func.func @transform_0(%arg0: i32) -> (i32, i32) {
    %c0_i32 = arith.constant 0 : i32
    %c0_i32_0 = arith.constant 0 : i32
    return %arg0, %c0_i32 : i32, i32
  }
  func.func @transform_1(%arg0: i32) -> (i32, i32) {
    %c0_i32 = arith.constant 0 : i32
    %c0_i32_0 = arith.constant 0 : i32
    %c0_i32_1 = arith.constant 0 : i32
    return %c0_i32, %c0_i32_0 : i32, i32
  }
  func.func @transform_2(%arg0: i32) -> (i32, i32) {
    %c0_i32 = arith.constant 0 : i32
    %c0_i32_0 = arith.constant 0 : i32
    %c0_i32_1 = arith.constant 0 : i32
    return %c0_i32, %c0_i32_0 : i32, i32
  }
  func.func @transform_3(%arg0: i32) -> (i32, i32) {
    %c0_i32 = arith.constant 0 : i32
    %c0_i32_0 = arith.constant 0 : i32
    %c0_i32_1 = arith.constant 0 : i32
    return %c0_i32, %c0_i32_0 : i32, i32
  }
  func.func @transform_4(%arg0: i32) -> (i32, i32) {
    %c0_i32 = arith.constant 0 : i32
    %c0_i32_0 = arith.constant 0 : i32
    %c0_i32_1 = arith.constant 0 : i32
    return %c0_i32, %c0_i32_0 : i32, i32
  }
  func.func @transform_5(%arg0: i32) -> (i32, i32) {
    %c0_i32 = arith.constant 0 : i32
    %c0_i32_0 = arith.constant 0 : i32
    return %arg0, %c0_i32 : i32, i32
  }
}

</mosaic_0001>

<bundles_post_ra>
// kernel: simple_ann_forward.1
= control target key start
LH: loop header
LB: loop body
LE: loop exit
PB: predicated region body
PF: predicated region fallthrough
CT: control target
= control target key end

     0   :  { %v663_v39 = vmov 0.0   ;;  %vm664_vm0 = vmmov 0   ;;  %s830_s1 = inlined_call_operand.vmem [shape: bf16[512,128], index: 1, kind: input, shape index: {}]   ;;  %s831_s0 = inlined_call_operand.vmem [shape: bf16[8,512], index: 0, kind: input, shape index: {}]   ;;  %s832_s3 = inlined_call_operand.vmem [shape: bf16[128,128], index: 3, kind: input, shape index: {}]   ;;  %s833_s2 = inlined_call_operand.vmem [shape: f32[1,128], index: 2, kind: input, shape index: {}]   ;;  %s834_s4 = inlined_call_operand.vmem [shape: f32[1,128], index: 4, kind: input, shape index: {}]   ;;  %s835_s5 = inlined_call_operand.vmem [shape: f32[8,128], index: 5, kind: output, shape index: {}]  }
   0x1   :  { %v619_v0 = vld [vmem:[%s830_s1 + $0x40] sm:$0xff]   ;;  %v623_v4 = vld [vmem:[%s830_s1 + $0x48] sm:$0xff]   ;;  %v627_v8 = vld [vmem:[%s830_s1 + $0x50] sm:$0xff]  }
   0x2   :  { %v620_v1 = vld [vmem:[%s830_s1 + $0xc0] sm:$0xff]   ;;  %544 = vmatprep.subr.bf16.mxu0 %v619_v0  ;;  %v624_v5 = vld [vmem:[%s830_s1 + $0xc8] sm:$0xff]   ;;  %v628_v9 = vld [vmem:[%s830_s1 + $0xd0] sm:$0xff]  }
   0x3   :  { %v621_v2 = vld [vmem:[%s830_s1] sm:$0xff]   ;;  %566 = vmatprep.subr.bf16.mxu1 %v620_v1  ;;  %v625_v6 = vld [vmem:[%s830_s1 + $0x8] sm:$0xff]   ;;  %v629_v10 = vld [vmem:[%s830_s1 + $0x10] sm:$0xff]  }
   0x4   :  { %v622_v3 = vld [vmem:[%s830_s1 + $0x80] sm:$0xff]   ;;  %545 = vmatpush3.bf16.msra.mxu0 %v621_v2  ;;  %v626_v7 = vld [vmem:[%s830_s1 + $0x88] sm:$0xff]   ;;  %v630_v11 = vld [vmem:[%s830_s1 + $0x90] sm:$0xff]  }
   0x5   :  { %567 = vmatpush3.bf16.msra.mxu1 %v622_v3  ;;  %546 = vmatprep.subr.bf16.mxu0 %v623_v4  ;;  %v631_v12 = vld [vmem:[%s830_s1 + $0x58] sm:$0xff]   ;;  %v635_v16 = vld [vmem:[%s830_s1 + $0x60] sm:$0xff]   ;;  %v639_v20 = vld [vmem:[%s830_s1 + $0x68] sm:$0xff]  }
   0x6   :  { %568 = vmatprep.subr.bf16.mxu1 %v624_v5  ;;  %v632_v13 = vld [vmem:[%s830_s1 + $0xd8] sm:$0xff]   ;;  %v636_v17 = vld [vmem:[%s830_s1 + $0xe0] sm:$0xff]   ;;  %v640_v21 = vld [vmem:[%s830_s1 + $0xe8] sm:$0xff]  }
   0x7   :  { %v633_v14 = vld [vmem:[%s830_s1 + $0x18] sm:$0xff]   ;;  %v637_v18 = vld [vmem:[%s830_s1 + $0x20] sm:$0xff]   ;;  %v641_v22 = vld [vmem:[%s830_s1 + $0x28] sm:$0xff]  }
   0x8   :  { %547 = vmatpush3.bf16.msra.mxu0 %v625_v6  ;;  %v634_v15 = vld [vmem:[%s830_s1 + $0x98] sm:$0xff]   ;;  %v638_v19 = vld [vmem:[%s830_s1 + $0xa0] sm:$0xff]   ;;  %v642_v23 = vld [vmem:[%s830_s1 + $0xa8] sm:$0xff]  }
   0x9   :  { %569 = vmatpush3.bf16.msra.mxu1 %v626_v7  ;;  %548 = vmatprep.subr.bf16.mxu0 %v627_v8  ;;  %v643_v24 = vld [vmem:[%s830_s1 + $0x70] sm:$0xff]   ;;  %v647_v28 = vld [vmem:[%s830_s1 + $0x78] sm:$0xff]   ;;  %v21_v32 = vld [vmem:[%s831_s0] sm:$0xff] }
   0xa   :  { %570 = vmatprep.subr.bf16.mxu1 %v628_v9  ;;  %v644_v25 = vld [vmem:[%s830_s1 + $0xf0] sm:$0xff]   ;;  %v648_v29 = vld [vmem:[%s830_s1 + $0xf8] sm:$0xff]   ;;  %v22_v33 = vld [vmem:[%s831_s0 + $0x8] sm:$0xff]  ;;  %v499_v34 = vcombine.low %v21_v32, %v21_v32  ;;  %v500_v35 = vcombine.high %v21_v32, %v21_v32 }
   0xb   :  { %v645_v26 = vld [vmem:[%s830_s1 + $0x30] sm:$0xff]   ;;  %v649_v30 = vld [vmem:[%s830_s1 + $0x38] sm:$0xff]   ;;  %v501_v36 = vcombine.low %v22_v33, %v22_v33  ;;  %v502_v37 = vcombine.high %v22_v33, %v22_v33  ;;  %v655_v38 = vld [vmem:[%s832_s3] sm:$0xff]  }
   0xc   :  { %549 = vmatpush3.bf16.msra.mxu0 %v629_v10  ;;  %v646_v27 = vld [vmem:[%s830_s1 + $0xb0] sm:$0xff]   ;;  %v650_v31 = vld [vmem:[%s830_s1 + $0xb8] sm:$0xff]   ;;  %332 = vmatprep.mubr.bf16.mxu0 %v500_v35  ;;  %v656_v40 = vld [vmem:[%s832_s3 + $0x8] sm:$0xff]  }
   0xd   :  { %571 = vmatpush3.bf16.msra.mxu1 %v630_v11  ;;  %550 = vmatprep.subr.bf16.mxu0 %v631_v12  ;;  %v657_v41 = vld [vmem:[%s832_s3 + $0x10] sm:$0xff]   ;;  %v658_v42 = vld [vmem:[%s832_s3 + $0x18] sm:$0xff]   ;;  %v659_v43 = vld [vmem:[%s832_s3 + $0x20] sm:$0xff]  }
   0xe   :  { %572 = vmatprep.subr.bf16.mxu1 %v632_v13  ;;  %372 = vmatprep.mubr.bf16.mxu1 %v502_v37  ;;  %v660_v44 = vld [vmem:[%s832_s3 + $0x28] sm:$0xff]   ;;  %v661_v45 = vld [vmem:[%s832_s3 + $0x30] sm:$0xff]   ;;  %v662_v46 = vld [vmem:[%s832_s3 + $0x38] sm:$0xff]  }
   0xf   :  { %v498_v49 = vld [vmem:[%s833_s2] ss:$0 sm:$0xff] }
  0x10   :  { %551 = vmatpush3.bf16.msra.mxu0 %v633_v14  ;;  %v535_v62 = vld [vmem:[%s834_s4] ss:$0 sm:$0xff] }
  0x11   :  { %573 = vmatpush3.bf16.msra.mxu1 %v634_v15  ;;  %552 = vmatprep.subr.bf16.mxu0 %v635_v16 }
  0x12   :  { %574 = vmatprep.subr.bf16.mxu1 %v636_v17 }
  0x14   :  { %553 = vmatpush3.bf16.msra.mxu0 %v637_v18 }
  0x15   :  { %575 = vmatpush3.bf16.msra.mxu1 %v638_v19  ;;  %554 = vmatprep.subr.bf16.mxu0 %v639_v20 }
  0x16   :  { %576 = vmatprep.subr.bf16.mxu1 %v640_v21 }
  0x18   :  { %555 = vmatpush3.bf16.msra.mxu0 %v641_v22 }
  0x19   :  { %577 = vmatpush3.bf16.msra.mxu1 %v642_v23  ;;  %556 = vmatprep.subr.bf16.mxu0 %v643_v24 }
  0x1a   :  { %578 = vmatprep.subr.bf16.mxu1 %v644_v25 }
  0x1c   :  { %557 = vmatpush3.bf16.msra.mxu0 %v645_v26 }
  0x1d   :  { %579 = vmatpush3.bf16.msra.mxu1 %v646_v27  ;;  %558 = vmatprep.subr.bf16.mxu0 %v647_v28 }
  0x1e   :  { %580 = vmatprep.subr.bf16.mxu1 %v648_v29 }
  0x20   :  { %559 = vmatpush3.bf16.msra.mxu0 %v649_v30 }
  0x21   :  { %581 = vmatpush3.bf16.msra.mxu1 %v650_v31  ;;  %597 = vmatprep.subr.bf16.mxu0 %v663_v39 }
  0x23   :  { %333 = vmatmul.mubr.bf16.vlgmr.msra.gmra.mrb[0].mxu0 %v499_v34 }
  0x24   :  { %373 = vmatmul.mubr.bf16.vlgmr.msra.gmra.mrb[0].mxu1 %v501_v36  ;;  %598 = vmatpush3.bf16.msra.mxu0 %v655_v38 }
  0x25   :  { %599 = vmatprep.subr.bf16.mxu0 %v663_v39  ;;  %613 = vmatprep.mubr.msk.bf16.mxu0 %vm664_vm0, %v663_v39 }
  0x28   :  { %600 = vmatpush3.bf16.msra.mxu0 %v656_v40 }
  0x29   :  { %601 = vmatprep.subr.bf16.mxu0 %v663_v39 }
  0x2c   :  { %602 = vmatpush3.bf16.msra.mxu0 %v657_v41 }
  0x2d   :  { %603 = vmatprep.subr.bf16.mxu0 %v663_v39 }
  0x30   :  { %604 = vmatpush3.bf16.msra.mxu0 %v658_v42 }
  0x31   :  { %605 = vmatprep.subr.bf16.mxu0 %v663_v39 }
  0x34   :  { %606 = vmatpush3.bf16.msra.mxu0 %v659_v43 }
  0x35   :  { %607 = vmatprep.subr.bf16.mxu0 %v663_v39 }
  0x38   :  { %608 = vmatpush3.bf16.msra.mxu0 %v660_v44 }
  0x39   :  { %609 = vmatprep.subr.bf16.mxu0 %v663_v39 }
  0x3c   :  { %610 = vmatpush3.bf16.msra.mxu0 %v661_v45 }
  0x3d   :  { %611 = vmatprep.subr.bf16.mxu0 %v663_v39 }
  0x40   :  { %612 = vmatpush3.bf16.msra.mxu0 %v662_v46 }
  0xf6   :  { %v560_v47 = vpop.f32.mrb[0].mxu0 }
  0xf7   :  { %v582_v48 = vpop.f32.mrb[0].mxu1  ;;  %v561_v50 = vpop.f32.mrb[1].mxu0 }
  0xf8   :  { %v583_v51 = vpop.f32.mrb[1].mxu1  ;;  %v562_v52 = vadd.f32 %v561_v50, %v560_v47  ;;  %v563_v54 = vpop.f32.mrb[2].mxu0 }
  0xf9   :  { %v584_v53 = vadd.f32 %v583_v51, %v582_v48  ;;  %v585_v55 = vpop.f32.mrb[2].mxu1  ;;  %v564_v56 = vpop.f32.mrb[3].mxu0 }
  0xfa   :  { %v586_v57 = vpop.f32.mrb[3].mxu1  ;;  %v335_v58 = vadd.f32 %v562_v52, %v498_v49 }
  0xfc   :  { %v375_v59 = vadd.f32 %v584_v53, %v335_v58 }
  0xfe   :  { %v380_v60 = vmax.f32 %v375_v59, 0.0 }
 0x100   :  { %v381_v61 = vpack.c.bf16 %v380_v60, %v380_v60 }
 0x102   :  { %614 = vmatmul.mubr.bf16.vlgmr.msra.gmra.mrb[4].mxu0 %v381_v61 }
 0x1d5   :  { %v487_v63 = vpop.f32.mrb[4].mxu0 }
 0x1d6   :  { %v488_v0 = vadd.f32 %v535_v62, %v487_v63  ;;  %v615_v1 = vpop.f32.mrb[5].mxu0 }
 0x1d7   :  { %v490_v2 = vpop.f32.mrb[6].mxu0 }
 0x1d8   :  { %493 = vst [vmem:[%s835_s5] sm:$0xff] %v488_v0  ;;  %v616_v3 = vpop.f32.mrb[7].mxu0 }

</bundles_post_ra>
